<compile_context>
chip_gen: v5e
topology: v5e:2x2
jax: 0.10.0
libtpu: 0.0.40
codegen_flags: <defaults>
</compile_context>

<pallas_src>
import math

import jax
import jax.numpy as jnp
import numpy as np
from jax.experimental import pallas as pl
from jax.experimental.pallas import tpu as pltpu

_HALO_LANES = 128  # lane-aligned width of the tiny per-tile halo side-band


def _vmem_budget_bytes():
    """Usable scoped-VMEM budget: 3/4 of physical VMEM, conservative v7x fallback."""
    phys = 64 * 1024 * 1024
    try:
        info = pltpu.get_tpu_info()
        phys = int(getattr(info, "vmem_capacity_bytes", phys))
    except Exception:
        pass
    return (phys * 3) // 4


def _per_step_vmem_bytes(tl, c_in, o, k, pad, x_bytes, w_bytes, use_im2col):
    """Per-grid-step VMEM working set from the actual block shapes (double-buffered inputs)."""
    body = 2 * c_in * tl * x_bytes                      # x tile (double buffered)
    noise = 2 * tl * 4                                  # noise tile
    outb = 2 * o * tl * 4                               # output tile
    wblk = 2 * o * k * c_in * w_bytes                   # modulated weight block (resident over l)
    halo = 2 * max(c_in, 8) * _HALO_LANES * x_bytes     # halo side-band
    window = c_in * (tl + 2 * pad) * x_bytes            # in-kernel assembled window
    stack = k * c_in * tl * x_bytes if use_im2col else 0
    acc = o * tl * 4
    return body + noise + outb + wblk + halo + window + stack + acc + (1 << 20)


def _pick_tile_l(L, c_in, o, k, pad, x_bytes, w_bytes, use_im2col, budget, max_tl=4096):
    """Largest 128-multiple tile that (a) fits ~60% of the VMEM budget and (b) minimizes
    the padded length ceil(L/tl)*tl (so ragged L does not blow up the padded output)."""
    l_up = max(128, ((L + 127) // 128) * 128)
    cap = min(max_tl, l_up)
    best_t, best_lp = 128, ((L + 127) // 128) * 128
    t = 128
    while t <= cap:
        if _per_step_vmem_bytes(t, c_in, o, k, pad, x_bytes, w_bytes, use_im2col) <= (budget * 3) // 5:
            lp = ((L + t - 1) // t) * t
            if (lp < best_lp) or (lp == best_lp and t > best_t):
                best_t, best_lp = t, lp
        t += 128
    return best_t


def styled_conv1d(x, style, noise, mod_w, mod_b, conv_w, conv_b, noise_w,
                  *, demodulate=True, tile_l=None, matmul_dtype=jnp.float32,
                  use_im2col=None):
    """StyledConv forward (conv_1d=True, groups=1).

    x: (B, C_in, L) f32; style: (B, D) f32; noise: (B, 1, L) f32.
    mod_w: (C_in, D); mod_b: (C_in,); conv_w: (O, C_in, K); conv_b: (O,); noise_w: scalar.
    """
    B, C_in, L = x.shape
    O, _, K = conv_w.shape
    D = style.shape[1]
    assert K % 2 == 1, "padding=K//2 matches PyTorch conv1d output length only for odd K"
    assert noise.shape == (B, 1, L)
    pad = K // 2
    assert 2 * pad <= _HALO_LANES

    f32 = jnp.float32
    x_bytes = jnp.dtype(matmul_dtype).itemsize
    w_bytes = x_bytes
    if use_im2col is None:
        # Deepen the MXU contraction via im2col only when the per-tap depth is shallow;
        # large C_in already fills the MXU per tap and skipping the stack saves VMEM (v7x).
        use_im2col = C_in < 256

    budget = _vmem_budget_bytes()
    if tile_l is None:
        tile_l = _pick_tile_l(L, C_in, O, K, pad, x_bytes, w_bytes, use_im2col, budget)
    tl = int(tile_l)
    assert tl % 128 == 0, "tile_l must be a multiple of 128 (lane-dense output blocks)"

    L_pad = ((L + tl - 1) // tl) * tl
    n_tiles = L_pad // tl

    mod_scale = 1.0 / math.sqrt(D)                 # EqualLinear: w/sqrt(in_dim)*lr_mul, w=lr_mul=1
    conv_scale = 1.0 / math.sqrt(C_in * K ** 2)    # fan_in uses kernel_size**2 (as in the torch code)

    style = jnp.asarray(style, f32)
    mod_w = jnp.asarray(mod_w, f32)
    mod_b = jnp.asarray(mod_b, f32)
    conv_w = jnp.asarray(conv_w, f32)
    conv_b = jnp.asarray(conv_b, f32)
    x_f = jnp.asarray(x, f32)
    noise_f = jnp.asarray(noise, f32)

    # ---- hoisted EqualLinear + per-batch modulation/demodulation (once per call, not per tile) ----
    s = style @ mod_w.T * mod_scale + mod_b                        # (B, C_in)
    w = conv_w[None] * (conv_scale * s)[:, None, :, None]          # (B, O, C_in, K), conv_scale folded
    if demodulate:
        norm = jnp.sqrt(jnp.sum(w * w, axis=(2, 3), keepdims=True))
        w = w / jnp.maximum(norm, 1e-12)                           # F.normalize(dim=-1), eps=1e-12
    if use_im2col:
        # (B, O, K*C_in), tap-major lane-flattened to match the in-kernel im2col row order.
        w_block = jnp.transpose(w, (0, 1, 3, 2)).reshape(B, O, K * C_in).astype(matmul_dtype)
        w_spec = pl.BlockSpec((1, O, K * C_in), lambda b, l: (b, 0, 0))
    else:
        # (B, K, O, C_in): per-tap weights indexed along a leading (non-lane) axis.
        w_block = jnp.transpose(w, (0, 3, 1, 2)).astype(matmul_dtype)
        w_spec = pl.BlockSpec((1, K, O, C_in), lambda b, l: (b, 0, 0, 0))

    # NoiseInjection weight folded into the noise tensor; conv bias as a (O, 1) broadcast operand.
    noise_s = noise_f * jnp.asarray(noise_w, f32)
    bias_2d = conv_b.reshape(O, 1)

    # x goes to the kernel in its ORIGINAL layout (bf16 cast at the source on the fast path).
    x_in = x_f.astype(matmul_dtype)
    if L_pad != L:
        # Zero-padding L matches the conv's own zero padding beyond L; extra outputs are sliced off.
        x_in = jnp.pad(x_in, ((0, 0), (0, 0), (0, L_pad - L)))
        noise_s = jnp.pad(noise_s, ((0, 0), (0, 0), (0, L_pad - L)))

    # Tiny lane-aligned halo side-band: for tile l, the pad columns just left/right of the tile.
    if pad > 0:
        x_r = x_in.reshape(B, C_in, n_tiles, tl)
        zed = jnp.zeros((B, C_in, 1, pad), x_in.dtype)
        left = jnp.concatenate([zed, x_r[:, :, :-1, tl - pad:]], axis=2)   # (B, C_in, n_tiles, pad)
        right = jnp.concatenate([x_r[:, :, 1:, :pad], zed], axis=2)        # (B, C_in, n_tiles, pad)
        halo = jnp.transpose(jnp.concatenate([left, right], axis=-1), (0, 2, 1, 3))
        halo = jnp.pad(halo, ((0, 0), (0, 0), (0, 0), (0, _HALO_LANES - 2 * pad)))
    else:
        halo = jnp.zeros((B, n_tiles, C_in, _HALO_LANES), x_in.dtype)

    sqrt2 = math.sqrt(2.0)            # python floats -> inlined constants
    neg = 0.2 * sqrt2                 # leaky slope with the sqrt(2) gain folded in

    def kernel(x_ref, halo_ref, noise_ref, w_ref, b_ref, out_ref):
        # x_ref:(1,C_in,tl)  halo_ref:(1,1,C_in,128)  noise_ref:(1,1,tl)
        # w_ref:(1,O,K*C_in) or (1,K,O,C_in)  b_ref:(O,1)  out_ref:(1,O,tl)
        body = x_ref[0]                                            # (C_in, tl)
        if pad > 0:
            h = halo_ref[0, 0]                                     # (C_in, 128)
            window = jnp.concatenate([h[:, :pad], body, h[:, pad:2 * pad]], axis=-1)
        else:
            window = body                                          # (C_in, tl + 2*pad)

        if use_im2col:
            # Single deep-contraction MXU matmul (O, K*C_in) @ (K*C_in, tl).
            x_stack = jnp.concatenate([window[:, t:t + tl] for t in range(K)], axis=0)
            acc = jnp.dot(w_ref[0], x_stack, preferred_element_type=jnp.float32)
        else:
            # K accumulating tap-matmuls; no (K*C_in, tl) stack materialized (VMEM relief).
            w_all = w_ref[0]                                       # (K, O, C_in)
            acc = jnp.dot(w_all[0], window[:, 0:tl], preferred_element_type=jnp.float32)
            for t in range(1, K):
                acc = acc + jnp.dot(w_all[t], window[:, t:t + tl],
                                    preferred_element_type=jnp.float32)

        # NoiseInjection (pre-scaled) + bias + leaky_relu(0.2) * sqrt(2) (gain folded in select).
        y = acc + noise_ref[0] + b_ref[...]
        out_ref[...] = (jnp.where(y >= 0.0, sqrt2, neg) * y)[None].astype(out_ref.dtype)

    per_step = _per_step_vmem_bytes(tl, C_in, O, K, pad, x_bytes, w_bytes, use_im2col)
    vmem_limit = int(min(max(2 * per_step, 32 * 1024 * 1024), budget))

    out = pl.pallas_call(
        kernel,
        out_shape=jax.ShapeDtypeStruct((B, O, L_pad), jnp.float32),
        grid_spec=pltpu.PrefetchScalarGridSpec(
            num_scalar_prefetch=0,
            # b outermost so the per-batch weight block stays resident across the L-tile sweep.
            # TODO(synk): for B==1 single-chip v7x inference, swap to (n_tiles, B) so the
            # L-tile axis can be split across the two TensorCores.
            grid=(B, n_tiles),
            in_specs=[
                pl.BlockSpec((1, C_in, tl), lambda b, l: (b, 0, l)),             # x body tile
                pl.BlockSpec((1, 1, C_in, _HALO_LANES), lambda b, l: (b, l, 0, 0)),  # halo side-band
                pl.BlockSpec((1, 1, tl), lambda b, l: (b, 0, l)),                # pre-scaled noise
                w_spec,                                                          # modulated weights
                pl.BlockSpec((O, 1), lambda b, l: (0, 0)),                       # conv bias
            ],
            out_specs=pl.BlockSpec((1, O, tl), lambda b, l: (b, 0, l)),
        ),
        compiler_params=pltpu.CompilerParams(
            dimension_semantics=("parallel", "parallel"),
            vmem_limit_bytes=vmem_limit),
    )(x_in, halo, noise_s, w_block, bias_2d)

    if L_pad != L:
        out = out[:, :, :L]
    return out


def ref_styled_conv1d(x, style, noise, mod_w, mod_b, conv_w, conv_b, noise_w,
                      *, demodulate=True):
    """Pure-JAX reference mirroring the PyTorch forward."""
    B, C_in, L = x.shape
    O, _, K = conv_w.shape
    D = style.shape[1]
    pad = K // 2
    mod_scale = 1.0 / math.sqrt(D)
    conv_scale = 1.0 / math.sqrt(C_in * K ** 2)

    s = style @ (mod_w * mod_scale).T + mod_b                          # (B, C_in)
    w = conv_scale * conv_w[None] * s[:, None, :, None]                # (B, O, C_in, K)
    if demodulate:
        norm = jnp.sqrt(jnp.sum(w.reshape(B, O, -1) ** 2, axis=-1))
        w = w / jnp.maximum(norm, 1e-12)[:, :, None, None]
    xp = jnp.pad(x, ((0, 0), (0, 0), (pad, pad)))
    out = jnp.zeros((B, O, L), jnp.float32)
    for t in range(K):
        out = out + jnp.einsum('boi,bil->bol', w[..., t], xp[:, :, t:t + L])
    out = out + noise_w * noise
    out = out + conv_b.reshape(1, O, 1)
    return jnp.where(out >= 0, out, 0.2 * out) * math.sqrt(2.0)


if __name__ == "__main__":
    # Small shapes consistent with StyledConv(conv_1d=True, groups=1).
    B, C_in, O, K, D, L = 2, 8, 8, 3, 16, 256

    key = jax.random.PRNGKey(0)
    k1, k2, k3, k4, k5, k6 = jax.random.split(key, 6)

    # Inputs (explicit noise; torch samples it when None).
    x = jax.random.normal(k1, (B, C_in, L), jnp.float32)
    style = jax.random.normal(k2, (B, D), jnp.float32)
    noise = jax.random.normal(k3, (B, 1, L), jnp.float32)

    # Parameters
    mod_w = jax.random.normal(k4, (C_in, D), jnp.float32)   # EqualLinear weight (/lr_mul=1)
    mod_b = jnp.ones((C_in,), jnp.float32)                  # bias_init=1
    conv_w = jax.random.normal(k5, (O, C_in, K), jnp.float32)
    conv_b = 0.1 * jax.random.normal(k6, (O,), jnp.float32)
    noise_w = jnp.float32(0.5)

    ref = ref_styled_conv1d(x, style, noise, mod_w, mod_b, conv_w, conv_b, noise_w)

    # 1) f32 MXU path, 2 L-tiles -> exercises the halo side-band.
    out = jax.block_until_ready(
        styled_conv1d(x, style, noise, mod_w, mod_b, conv_w, conv_b, noise_w, tile_l=128))
    np.testing.assert_allclose(np.asarray(out), np.asarray(ref), rtol=1e-5, atol=1e-5)

    # 2) bf16 MXU operands at the source (v6e/v7x fast path); demod/accumulate/epilogue stay f32.
    out_bf16 = jax.block_until_ready(
        styled_conv1d(x, style, noise, mod_w, mod_b, conv_w, conv_b, noise_w,
                      tile_l=128, matmul_dtype=jnp.bfloat16))
    np.testing.assert_allclose(np.asarray(out_bf16), np.asarray(ref), rtol=5e-2, atol=1e-1)

    # 3) K-tap accumulation path (used automatically for large C_in; forced here for coverage).
    out_tap = jax.block_until_ready(
        styled_conv1d(x, style, noise, mod_w, mod_b, conv_w, conv_b, noise_w,
                      tile_l=128, use_im2col=False))
    np.testing.assert_allclose(np.asarray(out_tap), np.asarray(ref), rtol=1e-5, atol=1e-5)

    # 4) Ragged L -> padded up to a lane-dense tile multiple in the wrapper, sliced back;
    #    also exercises the VMEM-aware automatic tile picker.
    L2 = 200
    x2, noise2 = x[:, :, :L2], noise[:, :, :L2]
    ref2 = ref_styled_conv1d(x2, style, noise2, mod_w, mod_b, conv_w, conv_b, noise_w)
    out2 = jax.block_until_ready(
        styled_conv1d(x2, style, noise2, mod_w, mod_b, conv_w, conv_b, noise_w))
    np.testing.assert_allclose(np.asarray(out2), np.asarray(ref2), rtol=1e-5, atol=1e-5)

    print("KERNEL_OK")
</pallas_src>

<mosaic_0001>
module attributes {stable_mosaic.version = 11 : i64} {
  func.func @kernel(%arg0: i32, %arg1: i32, %arg2: memref<1x8x128xf32, #tpu.memory_space<vmem>>, %arg3: memref<1x1x8x128xf32, #tpu.memory_space<vmem>>, %arg4: memref<1x1x128xf32, #tpu.memory_space<vmem>>, %arg5: memref<1x8x24xf32, #tpu.memory_space<vmem>>, %arg6: memref<8x1xf32, #tpu.memory_space<vmem>>, %arg7: memref<1x8x128xf32, #tpu.memory_space<vmem>>) attributes {dimension_semantics = [#tpu.dimension_semantics<parallel>, #tpu.dimension_semantics<parallel>], iteration_bounds = array<i64: 2, 2>, scalar_prefetch = 0 : i64, scratch_operands = 0 : i64, tpu.core_type = #tpu.core_type<tc>, window_params = [{transform_indices = @transform_0, window_bounds = array<i64: 1, 8, 128>}, {transform_indices = @transform_1, window_bounds = array<i64: 1, 1, 8, 128>}, {transform_indices = @transform_2, window_bounds = array<i64: 1, 1, 128>}, {transform_indices = @transform_3, window_bounds = array<i64: 1, 8, 24>}, {pipeline_mode = #tpu.pipeline_mode<synchronous>, transform_indices = @transform_4, window_bounds = array<i64: 8, 1>}, {transform_indices = @transform_5, window_bounds = array<i64: 1, 8, 128>}]} {
    %c0 = arith.constant 0 : index
    %c0_0 = arith.constant 0 : index
    %c0_1 = arith.constant 0 : index
    %0 = vector.load %arg2[%c0, %c0_0, %c0_1] : memref<1x8x128xf32, #tpu.memory_space<vmem>>, vector<1x8x128xf32>
    %1 = vector.shape_cast %0 : vector<1x8x128xf32> to vector<8x128xf32>
    %c0_2 = arith.constant 0 : index
    %c0_3 = arith.constant 0 : index
    %c0_4 = arith.constant 0 : index
    %c0_5 = arith.constant 0 : index
    %2 = vector.load %arg3[%c0_2, %c0_3, %c0_4, %c0_5] : memref<1x1x8x128xf32, #tpu.memory_space<vmem>>, vector<1x1x8x128xf32>
    %3 = vector.shape_cast %2 : vector<1x1x8x128xf32> to vector<8x128xf32>
    %4 = vector.extract_strided_slice %3 {offsets = [0, 0], sizes = [8, 1], strides = [1, 1]} : vector<8x128xf32> to vector<8x1xf32>
    %5 = vector.extract_strided_slice %3 {offsets = [0, 1], sizes = [8, 1], strides = [1, 1]} : vector<8x128xf32> to vector<8x1xf32>
    %6 = tpu.concatenate %4, %1, %5 in 1 : vector<8x1xf32>, vector<8x128xf32>, vector<8x1xf32> -> vector<8x130xf32>
    %7 = vector.extract_strided_slice %6 {offsets = [0, 0], sizes = [8, 128], strides = [1, 1]} : vector<8x130xf32> to vector<8x128xf32>
    %8 = vector.extract_strided_slice %6 {offsets = [0, 1], sizes = [8, 128], strides = [1, 1]} : vector<8x130xf32> to vector<8x128xf32>
    %9 = vector.extract_strided_slice %6 {offsets = [0, 2], sizes = [8, 128], strides = [1, 1]} : vector<8x130xf32> to vector<8x128xf32>
    %10 = tpu.concatenate %7, %8, %9 in 0 : vector<8x128xf32>, vector<8x128xf32>, vector<8x128xf32> -> vector<24x128xf32>
    %c0_6 = arith.constant 0 : index
    %c0_7 = arith.constant 0 : index
    %c0_8 = arith.constant 0 : index
    %11 = vector.load %arg5[%c0_6, %c0_7, %c0_8] : memref<1x8x24xf32, #tpu.memory_space<vmem>>, vector<1x8x24xf32>
    %12 = vector.shape_cast %11 : vector<1x8x24xf32> to vector<8x24xf32>
    %cst = arith.constant dense<0.000000e+00> : vector<8x128xf32>
    %13 = tpu.matmul %12, %10, %cst {dimension_numbers = #tpu.dot_dimension_numbers<[1], [0], [0], [1], [0, 0, 1, 1], [], []>} : vector<8x24xf32>, vector<24x128xf32>, vector<8x128xf32> -> vector<8x128xf32>
    %c0_9 = arith.constant 0 : index
    %c0_10 = arith.constant 0 : index
    %c0_11 = arith.constant 0 : index
    %14 = vector.load %arg4[%c0_9, %c0_10, %c0_11] : memref<1x1x128xf32, #tpu.memory_space<vmem>>, vector<1x1x128xf32>
    %15 = vector.shape_cast %14 : vector<1x1x128xf32> to vector<1x128xf32>
    %16 = vector.broadcast %15 : vector<1x128xf32> to vector<8x128xf32>
    %17 = arith.addf %13, %16 : vector<8x128xf32>
    %c0_12 = arith.constant 0 : index
    %c0_13 = arith.constant 0 : index
    %18 = vector.load %arg6[%c0_12, %c0_13] : memref<8x1xf32, #tpu.memory_space<vmem>>, vector<8x1xf32>
    %19 = vector.broadcast %18 : vector<8x1xf32> to vector<8x128xf32>
    %20 = arith.addf %17, %19 : vector<8x128xf32>
    %cst_14 = arith.constant 0.000000e+00 : f32
    %21 = vector.broadcast %cst_14 : f32 to vector<8x128xf32>
    %22 = arith.cmpf oge, %20, %21 : vector<8x128xf32>
    %cst_15 = arith.constant 1.41421354 : f32
    %cst_16 = arith.constant 0.282842726 : f32
    %23 = vector.broadcast %cst_15 : f32 to vector<8x128xf32>
    %24 = vector.broadcast %cst_16 : f32 to vector<8x128xf32>
    %25 = arith.select %22, %23, %24 : vector<8x128xi1>, vector<8x128xf32>
    %26 = arith.mulf %25, %20 : vector<8x128xf32>
    %27 = vector.shape_cast %26 : vector<8x128xf32> to vector<1x8x128xf32>
    %c0_17 = arith.constant 0 : index
    %c0_18 = arith.constant 0 : index
    %c0_19 = arith.constant 0 : index
    %28 = vector.load %arg7[%c0_17, %c0_18, %c0_19] : memref<1x8x128xf32, #tpu.memory_space<vmem>>, vector<1x8x128xf32>
    tpu.vector_store %arg7[%c0_17, %c0_18, %c0_19], %27 {strides = array<i32>} : memref<1x8x128xf32, #tpu.memory_space<vmem>>, vector<1x8x128xf32>,
    return
  }
  func.func @transform_0(%arg0: i32, %arg1: i32) -> (i32, i32, i32) {
    %c0_i32 = arith.constant 0 : i32
    %c0_i32_0 = arith.constant 0 : i32
    return %arg0, %c0_i32, %arg1 : i32, i32, i32
  }
  func.func @transform_1(%arg0: i32, %arg1: i32) -> (i32, i32, i32, i32) {
    %c0_i32 = arith.constant 0 : i32
    %c0_i32_0 = arith.constant 0 : i32
    %c0_i32_1 = arith.constant 0 : i32
    return %arg0, %arg1, %c0_i32, %c0_i32_0 : i32, i32, i32, i32
  }
  func.func @transform_2(%arg0: i32, %arg1: i32) -> (i32, i32, i32) {
    %c0_i32 = arith.constant 0 : i32
    %c0_i32_0 = arith.constant 0 : i32
    return %arg0, %c0_i32, %arg1 : i32, i32, i32
  }
  func.func @transform_3(%arg0: i32, %arg1: i32) -> (i32, i32, i32) {
    %c0_i32 = arith.constant 0 : i32
    %c0_i32_0 = arith.constant 0 : i32
    %c0_i32_1 = arith.constant 0 : i32
    return %arg0, %c0_i32, %c0_i32_0 : i32, i32, i32
  }
  func.func @transform_4(%arg0: i32, %arg1: i32) -> (i32, i32) {
    %c0_i32 = arith.constant 0 : i32
    %c0_i32_0 = arith.constant 0 : i32
    %c0_i32_1 = arith.constant 0 : i32
    return %c0_i32, %c0_i32_0 : i32, i32
  }
  func.func @transform_5(%arg0: i32, %arg1: i32) -> (i32, i32, i32) {
    %c0_i32 = arith.constant 0 : i32
    %c0_i32_0 = arith.constant 0 : i32
    return %arg0, %c0_i32, %arg1 : i32, i32, i32
  }
}

</mosaic_0001>

<bundles_post_ra>
// kernel: tpu_custom_call.1
= control target key start
LH: loop header
LB: loop body
LE: loop exit
PB: predicated region body
PF: predicated region fallthrough
CT: control target
= control target key end

     0   :  { %s1263_s0 = inlined_call_operand.hbm [shape: f32[2,8,256], index: 0, kind: input, shape index: {}]   ;;  %s1264_s1 = inlined_call_operand.hbm [shape: f32[2,2,8,128], index: 1, kind: input, shape index: {}]   ;;  %s1265_s2 = inlined_call_operand.vmem [shape: f32[2,1,256], index: 2, kind: input, shape index: {}]   ;;  %s1266_s3 = inlined_call_operand.hbm [shape: f32[2,8,24], index: 3, kind: input, shape index: {}]   ;;  %s1267_s4 = inlined_call_operand.vmem [shape: f32[8,1], index: 4, kind: input, shape index: {}]   ;;  %s1268_s5 = inlined_call_operand.hbm [shape: f32[2,8,256], index: 5, kind: output, shape index: {}]  }
   0x1   :  { %1278 = sst [smem:[#allocation21_spill]] %s1264_s1 }
   0x2   :  { %1279 = sst [smem:[#allocation22_spill]] %s1268_s5 }
   0x3   :  { %10 = vsyncpa [#allocation3], 0 }
   0x4   :  { %12 = vsyncpa [#allocation3 + $0x1], 0 }
   0x5   :  { %13 = vsyncpa [#allocation6], 0 }
   0x6   :  { %15 = vsyncpa [#allocation6 + $0x1], 0 }
   0x7   :  { %16 = vsyncpa [#allocation4], 0 }
   0x8   :  { %18 = vsyncpa [#allocation4 + $0x1], 0  ;;  %s1006_s18 = smov 0   ;;  %s1008_s19 = smov 0  }
   0x9   :  { %s1010_s20 = smov 0   ;;  %s1012_s21 = smov 0  }
   0xa   :  { %s1014_s22 = smov 0   ;;  %s1016_s23 = smov 0  }
   0xb   :  { %s1018_s24 = smov 0   ;;  %s1020_s25 = smov 0  }
   0xc   :  { %s1022_s26 = smov 0   ;;  %s1024_s27 = smov 0  }
   0xd   :  { %s1026_s28 = smov 0  }
   0xe LB: > { %1280 = sst [smem:[#allocation13_spill]] %s941_s21  ;;  %s1062_s29 = sadd.s32 4294967295, %s969_s28   ;;  %s969_s28 = sphi %s1026_s28, %s24_s28   ;;  %s965_s27 = sphi %s1024_s27, %s1312_s27   ;;  %s961_s26 = sphi %s1022_s26, %s1303_s26   ;;  %s957_s25 = sphi %s1020_s25, %s1311_s25   ;;  %s953_s24 = sphi %s1018_s24, %s1302_s24   ;;  %s949_s23 = sphi %s1016_s23, %s1310_s23   ;;  %s945_s22 = sphi %s1014_s22, %s1309_s22   ;;  %s941_s21 = sphi %s1012_s21, %s1308_s21   ;;  %s937_s20 = sphi %s1010_s20, %s1307_s20   ;;  %s933_s19 = sphi %s1008_s19, %s1306_s19   ;;  %s929_s18 = sphi %s1006_s18, %s1305_s18  }
   0xf   : > { %1281 = sst [smem:[#allocation14_spill]] %s949_s23  ;;  %s596_s30 = sadd.s32 4294967294, %s969_s28  }
  0x10   : > { %1282 = sst [smem:[#allocation15_spill]] %s961_s26  ;;  %s33_s6 = sadd.s32 1, %s961_s26 }
  0x11   : > { %s36_s7 = sadd.s32 1, %s965_s27  ;;  %p34_p0 = scmp.ge.s32.totalorder %s33_s6, 2 }
  0x12   : > { %s45_s8 = sadd.s32 1, %s949_s23  ;;  %p52_p1 = scmp.ne.s32.totalorder %s949_s23, %s945_s22 }
  0x13   : > { %p53_p2 = scmp.eq.s32.totalorder %s969_s28, 0  ;;  %s1314_s6 = smov (%p34_p0, %s33_s6), 0 }
  0x14   : > { %1283 = sst [smem:[#allocation16_spill]] %s1314_s6  ;;  %s1316_s7 = smov (!%p34_p0, %s36_s7), %s965_s27 }
  0x15   : > { %s41_s9 = ssub.s32 %s961_s26, %s1314_s6  ;;  %p1078_p3 = por %p53_p2, %p52_p1 }
  0x16   : > { %p38_p4 = scmp.ge.s32.totalorder %s1316_s7, 2  ;;  %p58_p5 = scmp.ne.s32.totalorder %s945_s22, %s941_s21 }
  0x17   : > { %p59_p6 = scmp.eq.s32.totalorder %s1062_s29, 0  ;;  %p187_p7 = scmp.eq.s32.totalorder %s1062_s29, 3 }
  0x18   : > { %s1318_s7 = smov (%p38_p4, %s1316_s7), 0  ;;  %p193_p10 = scmp.eq.s32.totalorder %s596_s30, 3 }
  0x19   : > { %1285 = sst [smem:[#allocation17_spill]] %s1318_s7  ;;  %p1090_p8 = por %p59_p6, %p58_p5 }
  0x1a   : > { %p1094_p9 = por %p187_p7, %p52_p1  ;;  %s1100_s13 = ssub.s32 %s965_s27, %s1318_s7 }
  0x1b   : > { %s42_s14 = sor.u32 %s41_s9, %s1100_s13  ;;  %p125_p11 = scmp.eq.s32.totalorder %s1100_s13, 0 }
  0x1c   : > { %s1287_s12 = scalar_select %p1094_p9, 1, 0 }
  0x1d   : > { %p43_p12 = scmp.eq.s32.totalorder %s42_s14, 0  ;;  %p1104_p13 = por %p193_p10, %p58_p5 }
  0x1e   : > { %1288 = sst [smem:[#allocation18_spill]] %s1287_s12  ;;  %p641_p0 = scmp.lt.s32.totalorder %s969_s28, 4 }
  0x1f   : > { %s1289_s15 = scalar_select %p1104_p13, 1, 0 }
  0x20   : > { %s1110_s16 = scalar_select %p43_p12, %s949_s23, %s45_s8  }
  0x21   : > { %1290 = sst [smem:[#allocation19_spill]] %s1289_s15  ;;  %s216_s17 = sand.u32 1, %s949_s23  }
  0x22   : > { %1291 = sst [smem:[#allocation20_spill]] %s1110_s16  ;;  %s600_s6 = sshll.u32 %s965_s27, 1 }
  0x23   : > { %s599_s21 = sshll.u32 %s216_s17, 3  ;;  %s224_s7 = sadd.s32 %s961_s26, %s600_s6 }
  0x24   : > { %s601_s12 = sshll.u32 %s224_s7, 3  ;;  %p1119_p1 = pnand %p641_p0, %p1078_p3 }
  0x25   : > { %s237_s9 = sand.u32 1, %s969_s28   ;;  %s1293_s1 = sld [smem:[#allocation21_spill]] }
  0x26   : > { %s241_s8 = scalar_lea.vmem [#allocation5], %s599_s21  ;;  %p607_p3 = scmp.ge.s32.totalorder %s969_s28, 1 }
  0x27   : > { %s251_s16 = sshll.u32 %s241_s8, 4  ;;  %s1128_s6 = scalar_lea.sflag [#allocation6], %s237_s9  ;;  %s252_s16 = int_to_ptr.vmem [resolvable:$true] %s251_s16 }
  0x28   : > { %p285_p4 = scmp.lt.s32.totalorder %s969_s28, 5  ;;  %s226_s15 = scalar_lea.hbm %s1263_s0, %s601_s12 }
  0x29   : > { %s220_s14 = scalar_lea.vmem [#allocation2], %s599_s21  ;;  %s228_s9 = sshll.u32 %s226_s15, 4  ;;  %s229_s9 = int_to_ptr.hbm [resolvable:$true] %s228_s9 }
  0x2a   : > { %p1134_p5 = pnand %p607_p3, %p285_p4  ;;  %s230_s8 = sshll.u32 %s220_s14, 4  ;;  %s231_s8 = int_to_ptr.vmem [resolvable:$true] %s230_s8 }
  0x2b   : > { %s247_s5 = scalar_lea.hbm %s1293_s1, %s601_s12  ;;  %s217_s1 = scalar_lea.sflag [#allocation3], %s216_s17 }
  0x2c   : > { %s249_s23 = sshll.u32 %s247_s5, 4  ;;  %p134_p7 = scmp.ne.s32.totalorder %s937_s20, %s933_s19  ;;  %s250_s23 = int_to_ptr.hbm [resolvable:$true] %s249_s23 }
  0x2d   : > { %633 = dma.hbm_to_vmem [thread:$0]  (!%p1119_p1), %s250_s23, 128, %s252_s16, %s1128_s6  }
  0x2e   : > { %630 = dma.hbm_to_vmem [thread:$0]  (!%p1119_p1), %s229_s9, 128, %s231_s8, %s217_s1  }
  0x2f   : > { %s127_s23 = sadd.s32 1, %s937_s20  ;;  %p140_p10 = scmp.ne.s32.totalorder %s933_s19, %s929_s18 }
  0x30   : > { %s1147_s16 = scalar_select %p125_p11, %s937_s20, %s127_s23  }
  0x31   : > { %s270_s26 = sand.u32 1, %s937_s20   ;;  %s606_s7 = sshll.u32 %s965_s27, 3 }
  0x32   : > { %p136_p12 = por %p134_p7, %p53_p2  ;;  %p1159_p3 = por %p140_p10, %p59_p6 }
  0x33   : > { %s605_s12 = sshll.u32 %s270_s26, 3  ;;  %s276_s30 = scalar_lea.hbm %s1266_s3, %s606_s7 }
  0x34   : > { %s278_s13 = sshll.u32 %s276_s30, 4  ;;  %s272_s10 = scalar_lea.vmem [#allocation7], %s605_s12  ;;  %s279_s13 = int_to_ptr.hbm [resolvable:$true] %s278_s13 }
  0x35   : > { %s280_s15 = sshll.u32 %s272_s10, 4  ;;  %p634_p11 = pnand %p641_p0, %p136_p12  ;;  %s281_s15 = int_to_ptr.vmem [resolvable:$true] %s280_s15 }
  0x36   : > { %289 = sbr.rel (%p1134_p5) target bundleno = 446 (0x1be), region = 40  ;;  %s1172_s18 = sand.u32 (!%p1134_p5), 1, %s945_s22  }
  0x37   : > { %636 = dma.hbm_to_vmem [thread:$0]  (!%p634_p11), %s279_s13, 128, %s281_s15, %s1128_s6  }
  0x38   : > { %s1175_s26 = sshll.u32 (!%p1134_p5), %s1172_s18, 3  ;;  %s292_s14 = scalar_lea.sflag (!%p1134_p5), [#allocation3], %s1172_s18 }
  0x39   : > { %s295_s8 = scalar_lea.vmem (!%p1134_p5), [#allocation2], %s1175_s26 }
  0x3b   : > { %912 = dma.done.wait (%p1090_p8), %s292_s14, 128  }
  0x3c   : > { %914 = vsyncadd (%p1090_p8), %s292_s14, 4294967168  ;;  %s301_s6 = sand.u32 1, %s1062_s29   ;;  %s305_s9 = scalar_lea.vmem [#allocation5], %s1175_s26 }
  0x3d   : > { %s302_s5 = scalar_lea.sflag [#allocation6], %s301_s6 }
  0x3e   : > { %916 = dma.done.wait (%p1090_p8), %s302_s5, 128  }
  0x3f   : > { %918 = vsyncadd (%p1090_p8), %s302_s5, 4294967168  ;;  %s313_s23 = sand.u32 1, %s933_s19  }
  0x40   : > { %s1190_s7 = sshll.u32 %s313_s23, 3 }
  0x41   : > { %s315_s12 = scalar_lea.vmem [#allocation7], %s1190_s7 }
  0x42   : > { %920 = dma.done.wait (%p1159_p3), %s302_s5, 128  }
  0x43   : > { %922 = vsyncadd (%p1159_p3), %s302_s5, 4294967168  ;;  %v367_v0 = vld [vmem:[%s295_s8] sm:$0xff]  ;;  %s971_s29 = smov 1   ;;  %v368_v1 = vld [vmem:[%s305_s9] sm:$0xff]  ;;  %vm373_vm0 = vcmask 7168   ;;  %p360_p2 = scmp.lt.s32.totalorder %s957_s25, 1 }
  0x44   : > { %370 = vrot.lane.b32.xlu0 %v367_v0, %s971_s29  ;;  %p362_p6 = scmp.lt.s32.totalorder %s953_s24, 1  ;;  %s972_s21 = smov 127   ;;  %v421_v6 = vld [vmem:[%s1267_s4] sm:$0xff]  ;;  %v974_v7 = vmov 0   ;;  %vm389_vm1 = vcmask 1031168   ;;  %vm382_vm2 = vcmask 1039360  }
  0x45   : > { %s361_s11 = scalar_select %p360_p2, %s957_s25, 1  ;;  %746 = vset.pattern.permute.xlu1 %v974_v7  ;;  %747 = vset.pattern.permute.xlu0 %v974_v7  ;;  %v392_v16 = vld [vmem:[%s315_s12] sm:$0xff]  ;;  %vm397_vm3 = vcmask 195584   ;;  %v975_v22 = vmov 0.28284273  }
  0x46   : > { %s363_s17 = scalar_select %p362_p6, %s953_s24, 1 }
  0x47   : > { %s612_s1 = sshll.u32 %s361_s11, 1  ;;  %s973_s30 = smov 126  }
  0x48   : > { %s365_s13 = sadd.s32 %s612_s1, %s363_s17  ;;  %s615_s5 = sshll.u32 %s957_s25, 1 }
  0x49   : > { %s366_s14 = scalar_lea.vmem %s1265_s2, %s365_s13  ;;  %s443_s9 = sadd.s32 %s953_s24, %s615_s5 }
  0x4a   : > { %v748_v17 = vld [vmem:[%s366_s14] ss:$0 sm:$0xff]  ;;  %s616_s23 = sshll.u32 %s443_s9, 3  ;;  %s1296_s17 = sld [smem:[#allocation22_spill]] }
  0x4b   : > { %s433_s24 = scalar_lea.sflag [#allocation4], %s1172_s18 }
  0x50   : > { %s445_s1 = scalar_lea.hbm %s1296_s17, %s616_s23 }
  0x51   : > { %s449_s12 = sshll.u32 %s445_s1, 4  ;;  %s450_s12 = int_to_ptr.hbm [resolvable:$true] %s449_s12 }
  0x52   : > { %s853_s25 = sshra.s32 %s450_s12, 4  ;;  %s854_s25 = int_to_ptr.hbm [resolvable:$true] %s853_s25 }
  0x53   : > { %s855_s13 = scalar_lea.hbm %s854_s25, 8  ;;  %p860_p4 = scmp.lt.s32.totalorder %s854_s25, %s1296_s17 }
  0x54   : > { %p856_p8 = scmp.ne.s32.totalorder %s854_s25, %s855_s13 }
  0x56   : > { %p857_p0 = pnand %p856_p8, %p1094_p9 }
  0x58   : > { %p858_p1 = pneg %p857_p0 }
  0xb6   : > { %v371_v2 = vpop.permute.xlu0 %370 }
  0xb7   : > { %v374_v3 = vsel %vm373_vm0, %v368_v1, %v371_v2  ;;  %v375_v4 = vsel %vm373_vm0, %v371_v2, %v368_v1 }
  0xb8   : > { %v736_v5 = vpack.i.bf16 %v375_v4, %v374_v3 }
  0xba   : > { %742 = vrot.lane.b32.xlu1 %v736_v5, %s972_s21  ;;  %737 = vrot.lane.b32.xlu0 %v736_v5, %s973_s30  ;;  %s359_s30 = scalar_lea.vmem [#allocation8], %s1175_s26  ;;  %s859_s26 = scalar_lea.hbm %s1296_s17, 32 }
  0xbb   : > { %s447_s7 = sshll.u32 %s359_s30, 4  ;;  %p861_p5 = scmp.lt.s32.totalorder %s859_s26, %s855_s13  ;;  %s448_s7 = int_to_ptr.vmem [resolvable:$true] %s447_s7 }
  0xbd   : > { %p862_p7 = por %p861_p5, %p860_p4 }
  0xbf   : > { %p863_p10 = pnand %p862_p7, %p858_p1 }
  0xc2   : > { %424 = vperm.xlu1 %746, %v421_v6  }
 0x12c   : > { %v743_v8 = vpop.permute.xlu1 %742  ;;  %v738_v9 = vpop.permute.xlu0 %737 }
 0x12d   : > { %v745_v10 = vunpack.i.h.bf16 %v743_v8  ;;  %v744_v11 = vunpack.i.l.bf16 %v743_v8  ;;  %v740_v12 = vunpack.i.h.bf16 %v738_v9  ;;  %v739_v13 = vunpack.i.l.bf16 %v738_v9 }
 0x12f   : > { %v390_v14 = vsel %vm389_vm1, %v739_v13, %v740_v12  ;;  %v383_v15 = vsel %vm382_vm2, %v744_v11, %v745_v10 }
 0x130   : > { %414 = vmatpush.msra.mxu0 %v390_v14 }
 0x132   : > { %415 = vmatpush.msra.mxu0 %v383_v15 }
 0x134   : > { %416 = vmatpush.msra.mxu0 %v374_v3  ;;  %v425_v19 = vpop.permute.xlu1 %424 }
 0x135   : > { %613 = vmatmul.msk.f32.vlgmr.msra.gmra.mxu0 %vm397_vm3, %v392_v16 }
 0x1b2   : > { %v418_v18 = vpop.f32.mrf.mxu0 }
 0x1b3   : > { %v419_v20 = vadd.f32 %v748_v17, %v418_v18 }
 0x1b5   : > { %v427_v21 = vadd.f32 %v425_v19, %v419_v20 }
 0x1b7   : > { %vm428_vm4 = vcmp.ge.f32.partialorder %v427_v21, 0.0 }
 0x1b8   : > { %v429_v23 = vsel %vm428_vm4, 1.4142135, %v975_v22 }
 0x1b9   : > { %v430_v24 = vmul.f32 %v429_v23, %v427_v21 }
 0x1bb   : > { %431 = vst [vmem:[%s359_s30] sm:$0xff] %v430_v24 }
 0x1bc   : > { %866 = shalt.err (!%p863_p10)
}
 0x1bd   : > { %625 = dma.vmem_to_hbm [thread:$0]  (%p1094_p9), %s448_s7, 128, %s450_s12, %s433_s24  }
 0x1be PF: > { %s1298_s18 = sld [smem:[#allocation13_spill]]  ;;  %p642_p12 = scmp.ge.s32.totalorder %s969_s28, 2 }
 0x1c0   : > { %p638_p3 = pnand %p642_p12, %p1104_p13 }
 0x1c2   : > { %p639_p11 = pneg %p638_p3 }
 0x1c4   : > { %s461_s5 = sand.u32 1, %s1298_s18  }
 0x1c5   : > { %s462_s9 = scalar_lea.sflag [#allocation4], %s461_s5 }
 0x1c6   : > { %924 = dma.done.wait (%p639_p11), %s462_s9, 128  }
 0x1c7   : > { %926 = vsyncadd (%p639_p11), %s462_s9, 4294967168  ;;  %s24_s28 = sadd.s32 1, %s969_s28   ;;  %s1300_s23 = sld [smem:[#allocation14_spill]] }
 0x1c8   : > { %p21_p2 = scmp.ge.s32.totalorder %s24_s28, 6   ;;  %s1301_s29 = sld [smem:[#allocation20_spill]] }
 0x1c9   : > { %s1302_s24 = sld [smem:[#allocation15_spill]]  ;;  %s1305_s18 = smov %s933_s19 }
 0x1ca   : > { %s1303_s26 = sld [smem:[#allocation16_spill]]  ;;  %s1306_s19 = smov %s937_s20 }
 0x1cb   : > { %s1304_s11 = sld [smem:[#allocation17_spill]]  ;;  %s1307_s20 = smov %s1147_s16 }
 0x1cc   : > { %s1308_s21 = smov %s945_s22  ;;  %s1311_s25 = smov %s965_s27 }
 0x1cd   : > { %s1309_s22 = smov %s1300_s23  ;;  %23 = sbr.rel (!%p21_p2) target bundleno = 14 (0xe), region = 112 }
 0x1ce   : > { %s1310_s23 = smov %s1301_s29 }
 0x1d1   : > { %s1312_s27 = smov %s1304_s11 }
 0x1d2   :  { %468 = vsyncpa [#allocation3], 1 }
 0x1d3   :  { %470 = vsyncpa [#allocation3 + $0x1], 1 }
 0x1d4   :  { %471 = vsyncpa [#allocation6], 1 }
 0x1d5   :  { %473 = vsyncpa [#allocation6 + $0x1], 1 }
 0x1d6   :  { %474 = vsyncpa [#allocation4], 1 }
 0x1d7   :  { %476 = vsyncpa [#allocation4 + $0x1], 1 }

</bundles_post_ra>
